<compile_context>
chip_gen: v6e
topology: v6e:2x2x1
jax: 0.10.0
libtpu: 0.0.40
codegen_flags: <defaults>
</compile_context>

<pallas_src>
import functools

import jax
import jax.numpy as jnp
from jax.experimental import pallas as pl
from jax.experimental.pallas import tpu as pltpu


# ----------------------------------------------------------------------------
# Fused Pallas kernel: all 6 hypernetwork heads in one 2-layer MLP.
#   h = relu(emb @ W1_emb + cmd * W1_cmd + b1)        == relu([emb,cmd] @ W1 + b1)
#   y = h @ W2_blockdiag + b2                          (block-diag => head-local)
# ----------------------------------------------------------------------------
def _fused_hyper_mlp_kernel(emb_ref, cmd_ref, w1e_ref, w1c_ref, b1_ref,
                            w2_ref, b2_ref, o_ref):
    h = jnp.dot(emb_ref[...], w1e_ref[...], preferred_element_type=jnp.float32)
    h = h + cmd_ref[...] * w1c_ref[...] + b1_ref[...]   # command outer-product + bias
    h = jnp.maximum(h, 0.0)                              # ReLU
    y = jnp.dot(h, w2_ref[...], preferred_element_type=jnp.float32) + b2_ref[...]
    o_ref[...] = y.astype(o_ref.dtype)


def fused_hyper_mlp(emb_rep, cmd_rep, w1e, w1c, b1, w2, b2, *, row_tile=256):
    """Run the fused hypernetwork MLP.

    emb_rep: [N, E]  tiled embeddings (batch x all layer tiles)
    cmd_rep: [N, 1]  repeated command
    w1e:     [E, 6H] stacked first-layer weights (embedding part)
    w1c:     [1, 6H] stacked first-layer weights (command row)
    b1:      [6H]
    w2:      [6H, OUT_PAD] block-diagonal second-layer weights (lane-dense)
    b2:      [OUT_PAD]
    """
    n, e = emb_rep.shape
    k1 = w1e.shape[1]
    d_out = w2.shape[1]
    b1_2d = b1.reshape(1, k1)
    b2_2d = b2.reshape(1, d_out)

    if n <= row_tile:
        # Tiny-N path: single full-array block in VMEM; no grid, no pipelining.
        return pl.pallas_call(
            _fused_hyper_mlp_kernel,
            out_shape=jax.ShapeDtypeStruct((n, d_out), jnp.float32),
        )(emb_rep, cmd_rep, w1e, w1c, b1_2d, w2, b2_2d)

    # Large-N path: tile rows; "parallel" lets v7x's 2 TensorCores split rows.
    n_pad = ((n + row_tile - 1) // row_tile) * row_tile
    if n_pad != n:
        emb_rep = jnp.pad(emb_rep, ((0, n_pad - n), (0, 0)))
        cmd_rep = jnp.pad(cmd_rep, ((0, n_pad - n), (0, 0)))
    out = pl.pallas_call(
        _fused_hyper_mlp_kernel,
        grid=(n_pad // row_tile,),
        in_specs=[
            pl.BlockSpec((row_tile, e), lambda i: (i, 0)),
            pl.BlockSpec((row_tile, 1), lambda i: (i, 0)),
            pl.BlockSpec((e, k1), lambda i: (0, 0)),
            pl.BlockSpec((1, k1), lambda i: (0, 0)),
            pl.BlockSpec((1, k1), lambda i: (0, 0)),
            pl.BlockSpec((k1, d_out), lambda i: (0, 0)),
            pl.BlockSpec((1, d_out), lambda i: (0, 0)),
        ],
        out_specs=pl.BlockSpec((row_tile, d_out), lambda i: (i, 0)),
        out_shape=jax.ShapeDtypeStruct((n_pad, d_out), jnp.float32),
        compiler_params=pltpu.CompilerParams(
            dimension_semantics=("parallel",)),
    )(emb_rep, cmd_rep, w1e, w1c, b1_2d, w2, b2_2d)
    return out[:n]


# ----------------------------------------------------------------------------
# Parameter construction (deterministic synthetic init).
# ----------------------------------------------------------------------------
def _init_linear(key, d_in, d_out, scale=0.1):
    kw, kb = jax.random.split(key)
    w = scale * jax.random.normal(kw, (d_in, d_out), jnp.float32)
    b = scale * jax.random.normal(kb, (d_out,), jnp.float32)
    return w, b


def _init_hypernetwork(key, hidden, z_dim, out_w_total, out_b):
    # net_w: Linear(z_dim, hidden) -> ReLU -> Linear(hidden, out_w_total)
    # net_b: Linear(z_dim, hidden) -> ReLU -> Linear(hidden, out_b)
    k = jax.random.split(key, 4)
    w1w, b1w = _init_linear(k[0], z_dim, hidden)
    w2w, b2w = _init_linear(k[1], hidden, out_w_total)
    w1b, b1b = _init_linear(k[2], z_dim, hidden)
    w2b, b2b = _init_linear(k[3], hidden, out_b)
    return dict(w1w=w1w, b1w=b1w, w2w=w2w, b2w=b2w,
                w1b=w1b, b1b=b1b, w2b=w2b, b2b=b2b)


def build_generator_params(key, layer_sizes, hidden_size, embedding_dim,
                           features_per_embedding):
    """Mirrors get_hypernetwork_mlp_generator + HyperNetworkGenerator.__init__."""
    assert len(layer_sizes) == 4, "this script builds the 4-layer-policy case"
    fpe = features_per_embedding
    z_dim = embedding_dim + 1

    keys = jax.random.split(key, 6)

    # input hypernetwork
    in_osw = [fpe, layer_sizes[0]]
    in_osb = fpe
    input_hn = _init_hypernetwork(keys[0], hidden_size, z_dim,
                                  in_osw[0] * in_osw[1], in_osb)
    # hidden hypernetwork (len(layer_sizes) > 3)
    hid_osw = [fpe, fpe]
    hid_osb = fpe
    hidden_hn = _init_hypernetwork(keys[1], hidden_size, z_dim,
                                   hid_osw[0] * hid_osw[1], hid_osb)
    # output hypernetwork
    out_osw = [layer_sizes[-1], fpe]
    out_osb = layer_sizes[-1]
    output_hn = _init_hypernetwork(keys[2], hidden_size, z_dim,
                                   out_osw[0] * out_osw[1], out_osb)

    in_tiling = [1, layer_sizes[1] // fpe]
    hidden_tiling = [[layer_sizes[1] // fpe, layer_sizes[2] // fpe]]
    out_tiling = [layer_sizes[-2] // fpe, 1]

    in_emb = jax.random.normal(keys[3], tuple(in_tiling) + (embedding_dim,), jnp.float32)
    hid_emb = jax.random.normal(keys[4], tuple(hidden_tiling[0]) + (embedding_dim,), jnp.float32)
    out_emb = jax.random.normal(keys[5], tuple(out_tiling) + (embedding_dim,), jnp.float32)

    layers = [
        dict(hn=input_hn, tiling=in_tiling, out_size_w=in_osw,
             out_size_b=in_osb, embeddings=in_emb),
        dict(hn=hidden_hn, tiling=hidden_tiling[0], out_size_w=hid_osw,
             out_size_b=hid_osb, embeddings=hid_emb),
        dict(hn=output_hn, tiling=out_tiling, out_size_w=out_osw,
             out_size_b=out_osb, embeddings=out_emb),
    ]
    return dict(layers=layers)


# ----------------------------------------------------------------------------
# One-time fusion of all 6 heads into stacked / block-diagonal weight tables.
# ----------------------------------------------------------------------------
def build_fused_tables(params):
    layers = params["layers"]
    E = layers[0]["embeddings"].shape[-1]
    H = layers[0]["hn"]["w1w"].shape[1]

    heads = []   # per head: (w1 [E+1,H], b1 [H], w2 [H,d], b2 [d])
    meta = []
    tile_off = 0
    out_off = 0
    for layer in layers:
        hn = layer["hn"]
        t0, t1 = layer["tiling"]
        osw0, osw1 = layer["out_size_w"]
        w_len = osw0 * osw1
        b_len = layer["out_size_b"]
        heads.append((hn["w1w"], hn["b1w"], hn["w2w"], hn["b2w"]))   # weight head
        heads.append((hn["w1b"], hn["b1b"], hn["w2b"], hn["b2b"]))   # bias head
        meta.append(dict(tile_off=tile_off, t0=t0, t1=t1, osw0=osw0, osw1=osw1,
                         w_off=out_off, w_len=w_len,
                         b_off=out_off + w_len, b_len=b_len))
        tile_off += t0 * t1
        out_off += w_len + b_len

    k1 = len(heads) * H                       # 6H
    out_total = out_off                       # 139 in the demo config
    out_pad = max(128, ((out_total + 127) // 128) * 128)   # lane-dense output

    w1e = jnp.concatenate([h[0][:E] for h in heads], axis=1)        # [E, 6H]
    w1c = jnp.concatenate([h[0][E:E + 1] for h in heads], axis=1)   # [1, 6H]
    b1 = jnp.concatenate([h[1] for h in heads], axis=0)             # [6H]

    w2 = jnp.zeros((k1, out_pad), jnp.float32)
    b2 = jnp.zeros((out_pad,), jnp.float32)
    col = 0
    for idx, h in enumerate(heads):
        d = h[2].shape[1]
        w2 = w2.at[idx * H:(idx + 1) * H, col:col + d].set(h[2])
        b2 = b2.at[col:col + d].set(h[3])
        col += d

    emb_tiles = jnp.concatenate(
        [layer["embeddings"].reshape(-1, E) for layer in layers], axis=0)  # [T_total, E]

    return dict(emb_tiles=emb_tiles, w1e=w1e, w1c=w1c, b1=b1, w2=w2, b2=b2,
                meta=meta, out_pad=out_pad)


# ----------------------------------------------------------------------------
# Forward pass (Generator.forward with noise=None, evaluator=None).
# ----------------------------------------------------------------------------
def generator_forward(fused, command):
    """command: [batch, 1] float32 -> [batch, parameter_dim] float32."""
    batch, cmd_dim = command.shape
    assert cmd_dim == 1
    emb_tiles = fused["emb_tiles"]                     # [T_total, E]
    t_total, e_dim = emb_tiles.shape

    emb_rep = jnp.broadcast_to(emb_tiles[None], (batch, t_total, e_dim))
    emb_rep = emb_rep.reshape(batch * t_total, e_dim)              # [N, E]
    cmd_rep = jnp.broadcast_to(command[:, None, :], (batch, t_total, 1))
    cmd_rep = cmd_rep.reshape(batch * t_total, 1)                  # [N, 1]

    y = fused_hyper_mlp(emb_rep, cmd_rep, fused["w1e"], fused["w1c"],
                        fused["b1"], fused["w2"], fused["b2"])     # [N, OUT_PAD]
    y = y.reshape(batch, t_total, -1)

    # Per-layer reshape / permute / bias-mean glue (kept in JAX).
    # TODO(synk): could fold the bias mean (XLU reduce) into the kernel epilogue.
    generated = []
    for m in fused["meta"]:
        t0, t1, osw0, osw1 = m["t0"], m["t1"], m["osw0"], m["osw1"]
        c = t0 * t1
        blk = y[:, m["tile_off"]:m["tile_off"] + c, :]
        w_flat = blk[:, :, m["w_off"]:m["w_off"] + m["w_len"]]
        b_flat = blk[:, :, m["b_off"]:m["b_off"] + m["b_len"]]
        # scale_layer_out=False (default) -> no scaling.
        w = w_flat.reshape(batch, t0, t1, osw0, osw1)
        w = jnp.transpose(w, (0, 2, 3, 1, 4)).reshape(batch, t1 * osw0, t0 * osw1)
        b = b_flat.reshape(batch, t0, t1, osw0).mean(axis=1).reshape(batch, t1 * osw0)
        generated.extend([w, b])

    flat = [p.reshape(batch, -1) for p in generated]
    return jnp.concatenate(flat, axis=1)


# ----------------------------------------------------------------------------
# Pure-JAX reference (mirrors the original per-layer PyTorch graph).
# ----------------------------------------------------------------------------
def _mlp2_ref(x, w1, b1, w2, b2):
    h = jnp.maximum(x @ w1 + b1, 0.0)
    return h @ w2 + b2


def generator_forward_ref(params, command):
    batch = command.shape[0]
    cmd_dim = command.shape[-1]
    generated = []
    for layer in params["layers"]:
        t0, t1 = layer["tiling"]
        osw0, osw1 = layer["out_size_w"]
        emb = layer["embeddings"]
        e_dim = emb.shape[-1]

        emb_rep = jnp.broadcast_to(emb[None], (batch, t0, t1, e_dim)).reshape(-1, e_dim)
        cmd_rep = jnp.broadcast_to(command[:, None, None, :],
                                   (batch, t0, t1, cmd_dim)).reshape(-1, cmd_dim)
        z = jnp.concatenate([emb_rep, cmd_rep], axis=1)

        hn = layer["hn"]
        w_flat = _mlp2_ref(z, hn["w1w"], hn["b1w"], hn["w2w"], hn["b2w"])
        b_flat = _mlp2_ref(z, hn["w1b"], hn["b1b"], hn["w2b"], hn["b2b"])

        w = w_flat.reshape(batch, t0, t1, osw0, osw1)
        w = jnp.transpose(w, (0, 2, 3, 1, 4)).reshape(batch, t1 * osw0, t0 * osw1)
        b = b_flat.reshape(batch, t0, t1, osw0).mean(axis=1).reshape(batch, t1 * osw0)
        generated.extend([w, b])
    flat = [p.reshape(p.shape[0], -1) for p in generated]
    return jnp.concatenate(flat, axis=1)


if __name__ == "__main__":
    key = jax.random.PRNGKey(0)
    k_param, k_cmd, k_cmd_big = jax.random.split(key, 3)

    # Small, consistent configuration:
    #   policy_neurons (layer_sizes) = [obs=4, h1=16, h2=16, act=3]
    #   hidden_sizes = (32,)          -> hypernetwork MLPs have one hidden layer
    #   hid_size_w (embedding_dim) = 8 -> z_dim = 9
    #   out_size_w[0] (features_per_embedding) = 8
    layer_sizes = [4, 16, 16, 3]
    hidden_size = 32
    embedding_dim = 8
    features_per_embedding = 8
    batch = 2

    params = build_generator_params(k_param, layer_sizes, hidden_size,
                                    embedding_dim, features_per_embedding)
    fused = build_fused_tables(params)

    # tot_reward: [batch, 1]
    tot_reward = jax.random.normal(k_cmd, (batch, 1), jnp.float32)

    fwd = jax.jit(functools.partial(generator_forward, fused))
    out = fwd(tot_reward)
    jax.block_until_ready(out)

    ref = generator_forward_ref(params, tot_reward)
    assert out.shape == ref.shape
    assert jnp.allclose(out, ref, atol=1e-4, rtol=1e-4), "kernel mismatch vs reference"

    # Also exercise the large-batch row-tiled ("parallel") path (v7x 2-TC scaling):
    # batch=100 -> N = 800 rows -> padded to 1024, grid=(4,).
    big_batch = 100
    tot_reward_big = jax.random.normal(k_cmd_big, (big_batch, 1), jnp.float32)
    out_big = jax.jit(functools.partial(generator_forward, fused))(tot_reward_big)
    jax.block_until_ready(out_big)
    ref_big = generator_forward_ref(params, tot_reward_big)
    assert out_big.shape == ref_big.shape
    assert jnp.allclose(out_big, ref_big, atol=1e-4, rtol=1e-4), "tiled-path mismatch"

    print("KERNEL_OK")
</pallas_src>

<mosaic_0001>
module attributes {stable_mosaic.version = 11 : i64} {
  func.func @_fused_hyper_mlp_kernel(%arg0: memref<16x8xf32, #tpu.memory_space<vmem>>, %arg1: memref<16x1xf32, #tpu.memory_space<vmem>>, %arg2: memref<8x192xf32, #tpu.memory_space<vmem>>, %arg3: memref<1x192xf32, #tpu.memory_space<vmem>>, %arg4: memref<1x192xf32, #tpu.memory_space<vmem>>, %arg5: memref<192x256xf32, #tpu.memory_space<vmem>>, %arg6: memref<1x256xf32, #tpu.memory_space<vmem>>, %arg7: memref<16x256xf32, #tpu.memory_space<vmem>>) attributes {dimension_semantics = [], scalar_prefetch = 0 : i64, scratch_operands = 0 : i64, tpu.core_type = #tpu.core_type<tc>} {
    %c0 = arith.constant 0 : index
    %c0_0 = arith.constant 0 : index
    %0 = vector.load %arg0[%c0, %c0_0] : memref<16x8xf32, #tpu.memory_space<vmem>>, vector<16x8xf32>
    %c0_1 = arith.constant 0 : index
    %c0_2 = arith.constant 0 : index
    %1 = vector.load %arg2[%c0_1, %c0_2] : memref<8x192xf32, #tpu.memory_space<vmem>>, vector<8x192xf32>
    %cst = arith.constant dense<0.000000e+00> : vector<16x192xf32>
    %2 = tpu.matmul %0, %1, %cst {dimension_numbers = #tpu.dot_dimension_numbers<[1], [0], [0], [1], [0, 0, 1, 1], [], []>} : vector<16x8xf32>, vector<8x192xf32>, vector<16x192xf32> -> vector<16x192xf32>
    %c0_3 = arith.constant 0 : index
    %c0_4 = arith.constant 0 : index
    %3 = vector.load %arg1[%c0_3, %c0_4] : memref<16x1xf32, #tpu.memory_space<vmem>>, vector<16x1xf32>
    %c0_5 = arith.constant 0 : index
    %c0_6 = arith.constant 0 : index
    %4 = vector.load %arg3[%c0_5, %c0_6] : memref<1x192xf32, #tpu.memory_space<vmem>>, vector<1x192xf32>
    %5 = vector.broadcast %3 : vector<16x1xf32> to vector<16x192xf32>
    %6 = vector.broadcast %4 : vector<1x192xf32> to vector<16x192xf32>
    %7 = arith.mulf %5, %6 : vector<16x192xf32>
    %8 = arith.addf %2, %7 : vector<16x192xf32>
    %c0_7 = arith.constant 0 : index
    %c0_8 = arith.constant 0 : index
    %9 = vector.load %arg4[%c0_7, %c0_8] : memref<1x192xf32, #tpu.memory_space<vmem>>, vector<1x192xf32>
    %10 = vector.broadcast %9 : vector<1x192xf32> to vector<16x192xf32>
    %11 = arith.addf %8, %10 : vector<16x192xf32>
    %cst_9 = arith.constant 0.000000e+00 : f32
    %12 = vector.broadcast %cst_9 : f32 to vector<16x192xf32>
    %13 = arith.maximumf %11, %12 : vector<16x192xf32>
    %c0_10 = arith.constant 0 : index
    %c0_11 = arith.constant 0 : index
    %14 = vector.load %arg5[%c0_10, %c0_11] : memref<192x256xf32, #tpu.memory_space<vmem>>, vector<192x256xf32>
    %cst_12 = arith.constant dense<0.000000e+00> : vector<16x256xf32>
    %15 = tpu.matmul %13, %14, %cst_12 {dimension_numbers = #tpu.dot_dimension_numbers<[1], [0], [0], [1], [0, 0, 1, 1], [], []>} : vector<16x192xf32>, vector<192x256xf32>, vector<16x256xf32> -> vector<16x256xf32>
    %c0_13 = arith.constant 0 : index
    %c0_14 = arith.constant 0 : index
    %16 = vector.load %arg6[%c0_13, %c0_14] : memref<1x256xf32, #tpu.memory_space<vmem>>, vector<1x256xf32>
    %17 = vector.broadcast %16 : vector<1x256xf32> to vector<16x256xf32>
    %18 = arith.addf %15, %17 : vector<16x256xf32>
    %c0_15 = arith.constant 0 : index
    %c0_16 = arith.constant 0 : index
    %19 = vector.load %arg7[%c0_15, %c0_16] : memref<16x256xf32, #tpu.memory_space<vmem>>, vector<16x256xf32>
    tpu.vector_store %arg7[%c0_15, %c0_16], %18 {strides = array<i32>} : memref<16x256xf32, #tpu.memory_space<vmem>>, vector<16x256xf32>,
    return
  }
}

</mosaic_0001>

<bundles_post_ra>
// kernel: generator_forward.1
= control target key start
LH: loop header
LB: loop body
LE: loop exit
PB: predicated region body
PF: predicated region fallthrough
CT: control target
= control target key end

     0   :  { %12 = vsyncpa [#allocation3], 0  ;;  %s409_s24 = smov [#allocation2]   ;;  %s498_s0 = inlined_call_operand.vmem [shape: f32[16,8], index: 0, kind: input, shape index: {}]   ;;  %s499_s1 = inlined_call_operand.vmem [shape: f32[16,1], index: 1, kind: input, shape index: {}]   ;;  %s500_s2 = inlined_call_operand.vmem [shape: f32[8,192], index: 2, kind: input, shape index: {}]   ;;  %s501_s3 = inlined_call_operand.vmem [shape: f32[1,192], index: 3, kind: input, shape index: {}]   ;;  %s502_s4 = inlined_call_operand.vmem [shape: f32[1,192], index: 4, kind: input, shape index: {}]   ;;  %s503_s5 = inlined_call_operand.hbm [shape: f32[192,256], index: 5, kind: input, shape index: {}]   ;;  %s504_s6 = inlined_call_operand.vmem [shape: f32[1,256], index: 6, kind: input, shape index: {}]   ;;  %s505_s7 = inlined_call_operand.vmem [shape: f32[16,256], index: 7, kind: output, shape index: {}]  }
   0x1   :  { %s28_s25 = sshll.u32 %s409_s24, 4  ;;  %s29_s25 = int_to_ptr.vmem [resolvable:$true] %s28_s25 }
   0x2   :  { %s395_s26 = scalar_lea.vmem %s29_s25, 6144  ;;  %p400_p1 = scmp.lt.s32.totalorder %s29_s25, %s29_s25 }
   0x3   :  { %p396_p0 = scmp.ne.s32.totalorder %s29_s25, %s395_s26  ;;  %p401_p2 = scmp.lt.s32.totalorder %s395_s26, %s395_s26 }
   0x5   :  { %p402_p3 = por %p401_p2, %p400_p1 }
   0x7   :  { %p403_p4 = pnand %p402_p3, %p396_p0 }
   0x9   :  { %406 = shalt.err (!%p403_p4)
}
   0xa   :  { %s410_s27 = smov 256   ;;  %s411_s28 = smov 16  }
   0xb   :  { %34 = dma.hbm_to_vmem [thread:$0]  %s503_s5, 6144, %s29_s25, [#allocation3], %s410_s27, %s410_s27, %s411_s28  }
   0xc   :  { %407 = dma.done.wait [#allocation3], 6144  }
   0xd   :  { %408 = vsyncadd [#allocation3], 4294961152  ;;  %v412_v0 = vmov 0.0   ;;  %v413_v1 = vmov 0   ;;  %v43_v2 = vld [vmem:[%s500_s2 + $0x8] sm:$0xff]  ;;  %v42_v3 = vld [vmem:[%s500_s2] sm:$0xff]  ;;  %v58_v56 = vlaneseq }
   0xe   :  { %143 = vmatprep.mubr.f32.mxu0 %v412_v0  ;;  %386 = vset.pattern.permute.xlu0 %v413_v1  ;;  %v40_v4 = vld [vmem:[%s498_s0] sm:$0xff]  ;;  %vm72_vm0 = vcmask 64512   ;;  %v207_v6 = vld [vmem:[#allocation2 + $0xf8] sm:$0xff]  ;;  %v206_v7 = vld [vmem:[#allocation2 + $0xf0] sm:$0xff]  ;;  %vm236_vm1 = vcmask 523264  }
   0xf   :  { %109 = vmatprep.subr.mxu0 %v43_v2  ;;  %v44_v5 = vld [vmem:[%s499_s1] sm:$0xff]  ;;  %v205_v8 = vld [vmem:[#allocation2 + $0xe8] sm:$0xff]  ;;  %v203_v12 = vld [vmem:[#allocation2 + $0xd8] sm:$0xff]  ;;  %333 = vmatprep.subr.mxu1 %v207_v6  ;;  %v59_v57 = vshrl.u32 %v58_v56, 7 }
  0x10   :  { %110 = vmatpush1.msra.mxu0 %v42_v3  ;;  %49 = vperm.xlu0 %386, %v44_v5   ;;  %v45_v9 = vld [vmem:[%s499_s1 + $0x8] sm:$0xff]  ;;  %v204_v10 = vld [vmem:[#allocation2 + $0xe0] sm:$0xff]  ;;  %v202_v13 = vld [vmem:[#allocation2 + $0xd0] sm:$0xff] }
  0x11   :  { %329 = vmatmul.mubr.msk.f32.vlgmr.msra.gmra.mxu0 %vm72_vm0, %v40_v4  ;;  %243 = vmatprep.subr.mxu0 %v207_v6  ;;  %v41_v11 = vld [vmem:[%s498_s0 + $0x8] sm:$0xff]  ;;  %v200_v15 = vld [vmem:[#allocation2 + $0xc0] sm:$0xff]  ;;  %v199_v16 = vld [vmem:[#allocation2 + $0xb8] sm:$0xff]  ;;  %v60_v58 = vsub.s32 0, %v59_v57  ;;  %v64_v60 = vsub.s32 1, %v59_v57 }
  0x12   :  { %149 = vmatprep.mubr.f32.mxu0 %v412_v0  ;;  %244 = vmatpush1.msra.mxu0 %v206_v7  ;;  %v201_v14 = vld [vmem:[#allocation2 + $0xc8] sm:$0xff]  ;;  %v198_v17 = vld [vmem:[#allocation2 + $0xb0] sm:$0xff]  ;;  %v196_v19 = vld [vmem:[#allocation2 + $0xa0] sm:$0xff] }
  0x13   :  { %245 = vmatprep.subr.mxu0 %v205_v8  ;;  %357 = vmatpush1.msra.mxu1 %v206_v7  ;;  %v197_v18 = vld [vmem:[#allocation2 + $0xa8] sm:$0xff]  ;;  %v195_v20 = vld [vmem:[#allocation2 + $0x98] sm:$0xff]  ;;  %v194_v21 = vld [vmem:[#allocation2 + $0x90] sm:$0xff] }
  0x14   :  { %54 = vperm.xlu0 %386, %v45_v9   ;;  %246 = vmatpush1.msra.mxu0 %v204_v10  ;;  %v193_v22 = vld [vmem:[#allocation2 + $0x88] sm:$0xff]  ;;  %v192_v23 = vld [vmem:[#allocation2 + $0x80] sm:$0xff]  ;;  %v191_v24 = vld [vmem:[#allocation2 + $0x78] sm:$0xff] }
  0x15   :  { %330 = vmatmul.mubr.msk.f32.gmra.mxu0 %vm72_vm0, %v41_v11  ;;  %247 = vmatprep.subr.mxu0 %v203_v12  ;;  %v190_v25 = vld [vmem:[#allocation2 + $0x70] sm:$0xff]  ;;  %v189_v26 = vld [vmem:[#allocation2 + $0x68] sm:$0xff]  ;;  %v188_v27 = vld [vmem:[#allocation2 + $0x60] sm:$0xff] }
  0x16   :  { %248 = vmatpush1.msra.mxu0 %v202_v13  ;;  %334 = vmatprep.subr.mxu1 %v205_v8  ;;  %v187_v28 = vld [vmem:[#allocation2 + $0x58] sm:$0xff]  ;;  %v186_v29 = vld [vmem:[#allocation2 + $0x50] sm:$0xff]  ;;  %v185_v30 = vld [vmem:[#allocation2 + $0x48] sm:$0xff] }
  0x17   :  { %249 = vmatprep.subr.mxu0 %v201_v14  ;;  %358 = vmatpush1.msra.mxu1 %v204_v10  ;;  %v184_v31 = vld [vmem:[#allocation2 + $0x40] sm:$0xff]  ;;  %v183_v32 = vld [vmem:[#allocation2 + $0x38] sm:$0xff]  ;;  %v182_v33 = vld [vmem:[#allocation2 + $0x30] sm:$0xff] }
  0x18   :  { %250 = vmatpush1.msra.mxu0 %v200_v15  ;;  %335 = vmatprep.subr.mxu1 %v203_v12  ;;  %v181_v34 = vld [vmem:[#allocation2 + $0x28] sm:$0xff]  ;;  %v180_v35 = vld [vmem:[#allocation2 + $0x20] sm:$0xff]  ;;  %v179_v36 = vld [vmem:[#allocation2 + $0x18] sm:$0xff] }
  0x19   :  { %251 = vmatprep.subr.mxu0 %v199_v16  ;;  %359 = vmatpush1.msra.mxu1 %v202_v13  ;;  %v178_v37 = vld [vmem:[#allocation2 + $0x10] sm:$0xff]  ;;  %v177_v38 = vld [vmem:[#allocation2 + $0x8] sm:$0xff]  ;;  %v176_v39 = vld [vmem:[#allocation2] sm:$0xff] }
  0x1a   :  { %252 = vmatpush1.msra.mxu0 %v198_v17  ;;  %336 = vmatprep.subr.mxu1 %v201_v14  ;;  %v223_v40 = vld [vmem:[#allocation2 + $0x178] sm:$0xff]  ;;  %v222_v41 = vld [vmem:[#allocation2 + $0x170] sm:$0xff]  ;;  %v221_v42 = vld [vmem:[#allocation2 + $0x168] sm:$0xff] }
  0x1b   :  { %253 = vmatprep.subr.mxu0 %v197_v18  ;;  %360 = vmatpush1.msra.mxu1 %v200_v15  ;;  %v220_v43 = vld [vmem:[#allocation2 + $0x160] sm:$0xff]  ;;  %v219_v44 = vld [vmem:[#allocation2 + $0x158] sm:$0xff]  ;;  %v218_v45 = vld [vmem:[#allocation2 + $0x150] sm:$0xff] }
  0x1c   :  { %254 = vmatpush1.msra.mxu0 %v196_v19  ;;  %337 = vmatprep.subr.mxu1 %v199_v16  ;;  %v217_v46 = vld [vmem:[#allocation2 + $0x148] sm:$0xff]  ;;  %v216_v47 = vld [vmem:[#allocation2 + $0x140] sm:$0xff]  ;;  %v215_v48 = vld [vmem:[#allocation2 + $0x138] sm:$0xff] }
  0x1d   :  { %255 = vmatprep.subr.mxu0 %v195_v20  ;;  %361 = vmatpush1.msra.mxu1 %v198_v17  ;;  %v214_v49 = vld [vmem:[#allocation2 + $0x130] sm:$0xff]  ;;  %v213_v50 = vld [vmem:[#allocation2 + $0x128] sm:$0xff]  ;;  %v212_v51 = vld [vmem:[#allocation2 + $0x120] sm:$0xff] }
  0x1e   :  { %256 = vmatpush1.msra.mxu0 %v194_v21  ;;  %338 = vmatprep.subr.mxu1 %v197_v18  ;;  %v211_v52 = vld [vmem:[#allocation2 + $0x118] sm:$0xff]  ;;  %v210_v53 = vld [vmem:[#allocation2 + $0x110] sm:$0xff]  ;;  %v209_v54 = vld [vmem:[#allocation2 + $0x108] sm:$0xff] }
  0x1f   :  { %257 = vmatprep.subr.mxu0 %v193_v22  ;;  %362 = vmatpush1.msra.mxu1 %v196_v19  ;;  %v208_v55 = vld [vmem:[#allocation2 + $0x100] sm:$0xff] }
  0x20   :  { %258 = vmatpush1.msra.mxu0 %v192_v23  ;;  %339 = vmatprep.subr.mxu1 %v195_v20  ;;  %v46_v59 = vld [vmem:[%s501_s3] sm:$0x3] }
  0x21   :  { %259 = vmatprep.subr.mxu0 %v191_v24  ;;  %363 = vmatpush1.msra.mxu1 %v194_v21  ;;  %v61_v61 = vrot.slane %v46_v59, %v60_v58  ;;  %v65_v63 = vrot.slane %v46_v59, %v64_v60  ;;  %v156_v1 = vld [vmem:[%s502_s4] sm:$0x3] }
  0x22   :  { %260 = vmatpush1.msra.mxu0 %v190_v25  ;;  %340 = vmatprep.subr.mxu1 %v193_v22  ;;  %v161_v5 = vrot.slane %v156_v1, %v60_v58  ;;  %v165_v7 = vrot.slane %v156_v1, %v64_v60 }
  0x23   :  { %261 = vmatprep.subr.mxu0 %v189_v26  ;;  %364 = vmatpush1.msra.mxu1 %v192_v23 }
  0x24   :  { %262 = vmatpush1.msra.mxu0 %v188_v27  ;;  %341 = vmatprep.subr.mxu1 %v191_v24  ;;  %v224_v24 = vld [vmem:[%s504_s6] sm:$0x3] }
  0x25   :  { %263 = vmatprep.subr.mxu0 %v187_v28  ;;  %365 = vmatpush1.msra.mxu1 %v190_v25  ;;  %v229_v25 = vrot.slane %v224_v24, %v60_v58 }
  0x26   :  { %264 = vmatpush1.msra.mxu0 %v186_v29  ;;  %342 = vmatprep.subr.mxu1 %v189_v26  ;;  %v233_v26 = vrot.slane %v224_v24, %v64_v60 }
  0x27   :  { %265 = vmatprep.subr.mxu0 %v185_v30  ;;  %366 = vmatpush1.msra.mxu1 %v188_v27 }
  0x28   :  { %266 = vmatpush1.msra.mxu0 %v184_v31  ;;  %343 = vmatprep.subr.mxu1 %v187_v28 }
  0x29   :  { %267 = vmatprep.subr.mxu0 %v183_v32  ;;  %367 = vmatpush1.msra.mxu1 %v186_v29 }
  0x2a   :  { %268 = vmatpush1.msra.mxu0 %v182_v33  ;;  %344 = vmatprep.subr.mxu1 %v185_v30 }
  0x2b   :  { %269 = vmatprep.subr.mxu0 %v181_v34  ;;  %368 = vmatpush1.msra.mxu1 %v184_v31 }
  0x2c   :  { %270 = vmatpush1.msra.mxu0 %v180_v35  ;;  %345 = vmatprep.subr.mxu1 %v183_v32 }
  0x2d   :  { %271 = vmatprep.subr.mxu0 %v179_v36  ;;  %369 = vmatpush1.msra.mxu1 %v182_v33 }
  0x2e   :  { %272 = vmatpush1.msra.mxu0 %v178_v37  ;;  %346 = vmatprep.subr.mxu1 %v181_v34 }
  0x2f   :  { %273 = vmatprep.subr.mxu0 %v177_v38  ;;  %370 = vmatpush1.msra.mxu1 %v180_v35 }
  0x30   :  { %274 = vmatpush1.msra.mxu0 %v176_v39  ;;  %347 = vmatprep.subr.mxu1 %v179_v36 }
  0x31   :  { %291 = vmatprep.subr.mxu0 %v223_v40  ;;  %371 = vmatpush1.msra.mxu1 %v178_v37 }
  0x32   :  { %292 = vmatpush2.msra.mxu0 %v222_v41  ;;  %348 = vmatprep.subr.mxu1 %v177_v38 }
  0x33   :  { %293 = vmatprep.subr.mxu0 %v221_v42  ;;  %372 = vmatpush1.msra.mxu1 %v176_v39 }
  0x34   :  { %294 = vmatpush2.msra.mxu0 %v220_v43  ;;  %349 = vmatprep.subr.mxu1 %v223_v40 }
  0x35   :  { %295 = vmatprep.subr.mxu0 %v219_v44  ;;  %373 = vmatpush2.msra.mxu1 %v222_v41 }
  0x36   :  { %296 = vmatpush2.msra.mxu0 %v218_v45  ;;  %350 = vmatprep.subr.mxu1 %v221_v42 }
  0x37   :  { %374 = vmatpush2.msra.mxu1 %v220_v43  ;;  %297 = vmatprep.subr.mxu0 %v217_v46 }
  0x38   :  { %351 = vmatprep.subr.mxu1 %v219_v44  ;;  %298 = vmatpush2.msra.mxu0 %v216_v47 }
  0x39   :  { %375 = vmatpush2.msra.mxu1 %v218_v45  ;;  %299 = vmatprep.subr.mxu0 %v215_v48 }
  0x3a   :  { %352 = vmatprep.subr.mxu1 %v217_v46  ;;  %300 = vmatpush2.msra.mxu0 %v214_v49 }
  0x3b   :  { %376 = vmatpush2.msra.mxu1 %v216_v47  ;;  %301 = vmatprep.subr.mxu0 %v213_v50 }
  0x3c   :  { %353 = vmatprep.subr.mxu1 %v215_v48  ;;  %302 = vmatpush2.msra.mxu0 %v212_v51 }
  0x3d   :  { %377 = vmatpush2.msra.mxu1 %v214_v49  ;;  %303 = vmatprep.subr.mxu0 %v211_v52 }
  0x3e   :  { %354 = vmatprep.subr.mxu1 %v213_v50  ;;  %304 = vmatpush2.msra.mxu0 %v210_v53 }
  0x3f   :  { %378 = vmatpush2.msra.mxu1 %v212_v51  ;;  %305 = vmatprep.subr.mxu0 %v209_v54 }
  0x40   :  { %355 = vmatprep.subr.mxu1 %v211_v52  ;;  %306 = vmatpush2.msra.mxu0 %v208_v55 }
  0x41   :  { %379 = vmatpush2.msra.mxu1 %v210_v53 }
  0x42   :  { %356 = vmatprep.subr.mxu1 %v209_v54 }
  0x43   :  { %380 = vmatpush2.msra.mxu1 %v208_v55 }
  0x8b   :  { %v50_v62 = vpop.permute.xlu0 %49 }
  0x8c   :  { %v68_v0 = vmul.f32 %v61_v61, %v50_v62  ;;  %v69_v2 = vmul.f32 %v65_v63, %v50_v62 }
  0x8f   :  { %v55_v3 = vpop.permute.xlu0 %54 }
  0x90   :  { %v70_v9 = vmul.f32 %v61_v61, %v55_v3  ;;  %v71_v13 = vmul.f32 %v65_v63, %v55_v3 }
  0xd1   :  { %v145_v4 = vpop.f32.mrf.mxu0 }
  0xd2   :  { %v146_v6 = vadd.f32 %v145_v4, %v68_v0 }
  0xd3   :  { %v147_v8 = vpop.f32.mrf.mxu0 }
  0xd4   :  { %v148_v10 = vadd.f32 %v147_v8, %v69_v2  ;;  %v168_v11 = vadd.f32 %v161_v5, %v146_v6 }
  0xd5   :  { %v151_v12 = vpop.f32.mrf.mxu0 }
  0xd6   :  { %v169_v14 = vadd.f32 %v165_v7, %v148_v10  ;;  %v152_v15 = vadd.f32 %v151_v12, %v70_v9  ;;  %v172_v19 = vmax.f32 %v168_v11, 0.0 }
  0xd7   :  { %v153_v16 = vpop.f32.mrf.mxu0 }
  0xd8   :  { %v173_v17 = vmax.f32 %v169_v14, 0.0  ;;  %v154_v18 = vadd.f32 %v153_v16, %v71_v13  ;;  %v170_v20 = vadd.f32 %v161_v5, %v152_v15 }
  0xda   :  { %331 = vmatprep.mubr.msk.f32.mxu0 %vm236_vm1, %v173_v17  ;;  %v171_v21 = vadd.f32 %v165_v7, %v154_v18  ;;  %v174_v23 = vmax.f32 %v170_v20, 0.0 }
  0xdb   :  { %308 = vmatmul.mubr.f32.vlgmr.msra.gmra.mxu0 %v172_v19 }
  0xdc   :  { %v175_v22 = vmax.f32 %v171_v21, 0.0 }
  0xde   :  { %332 = vmatprep.mubr.msk.f32.mxu1 %vm236_vm1, %v175_v22 }
  0xdf   :  { %314 = vmatmul.mubr.f32.vlgmr.msra.gmra.mxu1 %v174_v23 }
 0x19b   :  { %v309_v27 = vpop.f32.mrf.mxu0 }
 0x19c   :  { %v310_v28 = vadd.f32 %v309_v27, %v229_v25 }
 0x19d   :  { %v311_v29 = vpop.f32.mrf.mxu0 }
 0x19e   :  { %320 = vst [vmem:[%s505_s7] sm:$0xff] %v310_v28  ;;  %v312_v30 = vadd.f32 %v311_v29, %v233_v26 }
 0x19f   :  { %v315_v31 = vpop.f32.mrf.mxu1 }
 0x1a0   :  { %321 = vst [vmem:[%s505_s7 + $0x8] sm:$0xff] %v312_v30  ;;  %v316_v32 = vadd.f32 %v315_v31, %v229_v25 }
 0x1a1   :  { %v317_v33 = vpop.f32.mrf.mxu1 }
 0x1a2   :  { %322 = vst [vmem:[%s505_s7 + $0x10] sm:$0xff] %v316_v32  ;;  %v318_v34 = vadd.f32 %v317_v33, %v233_v26 }
 0x1a4   :  { %323 = vst [vmem:[%s505_s7 + $0x18] sm:$0xff] %v318_v34 }
 0x1a5   :  { %328 = vsyncpa [#allocation3], 1 }

</bundles_post_ra>
